<compile_context>
chip_gen: v5e
topology: v5e:2x2
jax: 0.10.0
libtpu: 0.0.40
codegen_flags: <defaults>
</compile_context>

<pallas_src>
import functools

import jax
import jax.numpy as jnp
from jax import lax
from jax.experimental import pallas as pl
from jax.experimental.pallas import tpu as pltpu


_VMEM_BUDGET = 12 * 1024 * 1024     # pipeline working-set target (all chips)
_VMEM_LIMIT = 32 * 1024 * 1024      # scoped-VMEM request (safe on v5e/v6e/v7x)


def _round_up(x, m):
    return (x + m - 1) // m * m


def _vmem_cost(tm, tk, cp, in_bytes):
    a = 2 * tm * tk * in_bytes          # A tile, double buffered
    w = 2 * tk * cp * in_bytes          # W tile, double buffered (K-tiled)
    r = 2 * tm * cp * in_bytes          # residual tile (upper bound)
    o = 2 * tm * cp * 4                 # f32 output tile
    acc = tm * cp * 4                   # f32 accumulator scratch
    b = 2 * cp * 4
    return a + w + r + o + acc + b


def _pick_tiles(mp, kp, cp, in_bytes, max_k_tile=None):
    """VMEM-aware (tm, tk): prefer >=2 M-blocks (feeds both v7x TensorCores),
    then the largest tiles that keep the working set under _VMEM_BUDGET."""
    tk_opts = sorted({t for t in (kp, 8192, 4096, 2048, 1024, 512, 256, 128)
                      if t <= kp and kp % t == 0
                      and (max_k_tile is None or t <= max_k_tile)},
                     reverse=True)
    if not tk_opts:
        tk_opts = [128]
    tm_opts = sorted({t for t in (1024, 512, 256, 128, 64, 32, 16, 8)
                      if t <= mp and mp % t == 0}, reverse=True)
    best = None
    for tm in tm_opts:
        for tk in tk_opts:
            if _vmem_cost(tm, tk, cp, in_bytes) > _VMEM_BUDGET:
                continue
            key = ((mp // tm) >= 2, tm, tk)
            if best is None or key > best[0]:
                best = (key, (tm, tk))
    if best is None:                      # pathological sizes: minimum tiles
        return tm_opts[-1], tk_opts[-1]
    return best[1]


# ----------------------------- Pallas kernels -------------------------------

def _mm_prelu_kernel(scal_ref, a_ref, w_ref, b_ref, o_ref, acc_ref):
    # out = PReLU(A @ W + b); K-tiled accumulation in f32 VMEM scratch.
    @pl.when(pl.program_id(1) == 0)
    def _init():
        acc_ref[...] = jnp.zeros_like(acc_ref)

    acc_ref[...] += jnp.dot(a_ref[...], w_ref[...],
                            preferred_element_type=jnp.float32)

    @pl.when(pl.program_id(1) == pl.num_programs(1) - 1)
    def _finalize():
        acc = acc_ref[...] + b_ref[...]
        alpha = scal_ref[0]
        o_ref[...] = jnp.where(acc >= 0, acc, alpha * acc).astype(o_ref.dtype)


def _mm_prelu_res_kernel(scal_ref, a_ref, w_ref, b_ref, r_ref, o_ref, acc_ref):
    # out = PReLU(A @ W + b) + sign * residual   (sign = scal_ref[1])
    @pl.when(pl.program_id(1) == 0)
    def _init():
        acc_ref[...] = jnp.zeros_like(acc_ref)

    acc_ref[...] += jnp.dot(a_ref[...], w_ref[...],
                            preferred_element_type=jnp.float32)

    @pl.when(pl.program_id(1) == pl.num_programs(1) - 1)
    def _finalize():
        acc = acc_ref[...] + b_ref[...]
        alpha = scal_ref[0]
        act = jnp.where(acc >= 0, acc, alpha * acc)
        res = scal_ref[1] * r_ref[...].astype(jnp.float32)
        o_ref[...] = (act + res).astype(o_ref.dtype)


def matmul_bias_prelu(a, w, b, alpha, residual=None, res_sign=1.0,
                      compute_dtype=jnp.float32, max_k_tile=None):
    """PReLU(a @ w + b) (+ res_sign * residual) as one Pallas TPU kernel.

    a:        (M, K)     im2col patches, row = output pixel (n, y, x)
    w:        (K, Cout)  flattened weights
    b:        (Cout,)
    residual: (M, Cout)  or None (no zero residual is ever materialised)
    returns   (M, Cout)  float32
    """
    m, kdim = a.shape
    cout = w.shape[1]
    in_bytes = jnp.dtype(compute_dtype).itemsize

    mp = _round_up(m, 8)           # sublane padding of the streamed rows
    kp = _round_up(kdim, 128)      # lane padding of the contraction dim
    cp = _round_up(cout, 128)      # lane-dense output -> unmasked stores
    tm, tk = _pick_tiles(mp, kp, cp, in_bytes, max_k_tile)

    a = jnp.pad(a, ((0, mp - m), (0, kp - kdim))).astype(compute_dtype)
    w = jnp.pad(w, ((0, kp - kdim), (0, cp - cout))).astype(compute_dtype)
    b2 = jnp.pad(b.astype(jnp.float32), (0, cp - cout)).reshape(1, cp)
    scal = jnp.stack([jnp.asarray(alpha, jnp.float32),
                      jnp.asarray(res_sign, jnp.float32)])

    grid = (mp // tm, kp // tk)    # reduction (K) axis last
    in_specs = [
        pl.BlockSpec(memory_space=pltpu.MemorySpace.SMEM),    # [alpha, sign]
        pl.BlockSpec((tm, tk), lambda i, k: (i, k)),          # A (streamed)
        # TODO(synk): W / bias are grid-constant along i; single-buffer them
        # (pipeline_mode=pl.Buffered(1)) once confirmed safe in this jax rev.
        pl.BlockSpec((tk, cp), lambda i, k: (k, 0)),          # W
        pl.BlockSpec((1, cp), lambda i, k: (0, 0)),           # bias
    ]
    out_spec = pl.BlockSpec((tm, cp), lambda i, k: (i, 0))
    out_shape = jax.ShapeDtypeStruct((mp, cp), jnp.float32)
    cparams = pltpu.CompilerParams(
        dimension_semantics=("parallel", "arbitrary"),
        vmem_limit_bytes=_VMEM_LIMIT)
    scratch = [pltpu.VMEM((tm, cp), jnp.float32)]

    if residual is None:
        out = pl.pallas_call(
            _mm_prelu_kernel,
            out_shape=out_shape,
            grid=grid,
            in_specs=in_specs,
            out_specs=out_spec,
            scratch_shapes=scratch,
            compiler_params=cparams,
        )(scal, a, w, b2)
    else:
        r = jnp.pad(residual,
                    ((0, mp - m), (0, cp - cout))).astype(compute_dtype)
        out = pl.pallas_call(
            _mm_prelu_res_kernel,
            out_shape=out_shape,
            grid=grid,
            in_specs=in_specs + [pl.BlockSpec((tm, cp), lambda i, k: (i, 0))],
            out_specs=out_spec,
            scratch_shapes=scratch,
            compiler_params=cparams,
        )(scal, a, w, b2, r)

    return out[:m, :cout]


# ------------------------------- XLA glue ------------------------------------

def _im2col_nhwc(x, k, stride, padding):
    """x: (N, H, W, C) -> (N*Ho*Wo, k*k*C); patch column order = (ki, kj, c)."""
    n, h, w, c = x.shape
    xp = jnp.pad(x, ((0, 0), (padding, padding), (padding, padding), (0, 0)))
    ho = (h + 2 * padding - k) // stride + 1
    wo = (w + 2 * padding - k) // stride + 1
    cols = []
    for i in range(k):
        for j in range(k):
            cols.append(xp[:, i:i + stride * (ho - 1) + 1:stride,
                           j:j + stride * (wo - 1) + 1:stride, :])
    patches = jnp.stack(cols, axis=3)            # (N, Ho, Wo, k*k, C)
    return patches.reshape(n * ho * wo, k * k * c), (n, ho, wo)


def _subpixel_deconv_weights(wd, bd, stride, padding):
    """Phase-stacked weights for ConvTranspose2d(k=2s, stride=s, p=(k-s)/2).

    With A = 3x3 / stride-1 / pad-1 im2col of the LOW-RES input,
    (A @ W_all)[m, (py*s+px)*Cout + co] is the deconv output at high-res pixel
    (s*t+py, s*u+px) for row m = (n, t, u).  Only ceil(k/s)^2 = 4 of the 9
    window taps are non-zero per phase (2.25x weight padding, but ~16x fewer
    MACs and far less A traffic than the dilated-input formulation)."""
    cin, cout, k, _ = wd.shape
    s = stride
    assert k == 2 * s and 2 * padding == k - s, \
        "sub-pixel deconv path expects k=2s, p=(k-s)/2"
    blocks = []
    for py in range(s):
        ky0 = (py + padding) % s
        dy = (py + padding) // s              # input-row offset of tap ky0
        for px in range(s):
            kx0 = (px + padding) % s
            dx = (px + padding) // s
            # 2x2 taps in window order: window row dy+a holds tap ky0+s*(1-a).
            w22 = jnp.stack(
                [jnp.stack([wd[:, :, ky0 + s * (1 - a), kx0 + s * (1 - b)]
                            for b in range(2)], axis=0)
                 for a in range(2)], axis=0)          # (2, 2, Cin, Cout)
            w33 = jnp.pad(w22, ((dy, 1 - dy), (dx, 1 - dx), (0, 0), (0, 0)))
            blocks.append(w33)                        # (3, 3, Cin, Cout)
    w_all = jnp.stack(blocks, axis=-2)                # (3, 3, Cin, s*s, Cout)
    w_all = w_all.reshape(3 * 3 * cin, s * s * cout)
    b_all = jnp.tile(bd, s * s)
    return w_all, b_all


def down_block_dbpn(x_nchw, p, compute_dtype=jnp.float32, max_k_tile=None):
    """DownBlock_DBPN: l0 = PReLU(conv(x)); h0 = PReLU(deconv(l0));
       l1 = PReLU(conv(h0 - x)); return l1 + l0.
    Activations stay in a flat (M, C) NHWC layout between the Pallas calls."""
    n, c, h, w = x_nchw.shape
    s, k, pad = 4, 8, 2
    assert h % s == 0 and w % s == 0
    ho, wo = h // s, w // s
    mm = functools.partial(matmul_bias_prelu, compute_dtype=compute_dtype,
                           max_k_tile=max_k_tile)

    x = x_nchw.transpose(0, 2, 3, 1)                    # single NCHW->NHWC pass

    # --- conv1: l0 = PReLU(conv_s4(x)) ---------------------------------
    a1, _ = _im2col_nhwc(x, k, s, pad)                               # (M, 64C)
    w1 = p["w1"].transpose(2, 3, 1, 0).reshape(k * k * c, c)
    l0 = mm(a1, w1, p["b1"], p["a1"])                                # (M, C)

    # --- deconv (sub-pixel): diff = PReLU(deconv(l0)) - x  (x fused) ---
    a2, _ = _im2col_nhwc(l0.reshape(n, ho, wo, c), 3, 1, 1)          # (M, 9C)
    w2, b2 = _subpixel_deconv_weights(p["w2"], p["b2"], s, pad)      # (9C,16C)
    x_ph = x.reshape(n, ho, s, wo, s, c).transpose(0, 1, 3, 2, 4, 5)
    x_ph = x_ph.reshape(n * ho * wo, s * s * c)          # phases on columns
    diff = mm(a2, w2, b2, p["a2"], residual=x_ph, res_sign=-1.0)     # (M, 16C)

    # --- conv3: out = PReLU(conv_s4(diff)) + l0  (l0 fused) -------------
    diff_nhwc = diff.reshape(n, ho, wo, s, s, c).transpose(0, 1, 3, 2, 4, 5)
    diff_nhwc = diff_nhwc.reshape(n, h, w, c)
    a3, _ = _im2col_nhwc(diff_nhwc, k, s, pad)
    w3 = p["w3"].transpose(2, 3, 1, 0).reshape(k * k * c, c)
    out = mm(a3, w3, p["b3"], p["a3"], residual=l0, res_sign=1.0)    # (M, C)

    return out.reshape(n, ho, wo, c).transpose(0, 3, 1, 2)           # NCHW


# --------------------------- pure-JAX reference ------------------------------

def _prelu(x, alpha):
    return jnp.where(x >= 0, x, alpha * x)


def ref_forward(x, p):
    dn = ("NCHW", "OIHW", "NCHW")

    def conv(x, w, b, a):
        y = lax.conv_general_dilated(x, w, (4, 4), [(2, 2), (2, 2)],
                                     dimension_numbers=dn)
        return _prelu(y + b.reshape(1, -1, 1, 1), a)

    def deconv(x, w, b, a):
        w_conv = jnp.flip(w, (-1, -2)).transpose(1, 0, 2, 3)
        y = lax.conv_general_dilated(x, w_conv, (1, 1), [(5, 5), (5, 5)],
                                     lhs_dilation=(4, 4),
                                     dimension_numbers=dn)
        return _prelu(y + b.reshape(1, -1, 1, 1), a)

    l0 = conv(x, p["w1"], p["b1"], p["a1"])
    h0 = deconv(l0, p["w2"], p["b2"], p["a2"])
    l1 = conv(h0 - x, p["w3"], p["b3"], p["a3"])
    return l1 + l0


# --------------------------------- main ---------------------------------------

if __name__ == "__main__":
    key = jax.random.PRNGKey(0)
    N, C, H, W = 2, 4, 16, 16
    K = 8
    k1, k2, k3, k4, k5, k6, kx = jax.random.split(key, 7)

    params = {
        # ConvBlock weights: (Cout, Cin, k, k)
        "w1": 0.05 * jax.random.normal(k1, (C, C, K, K), jnp.float32),
        "b1": 0.05 * jax.random.normal(k2, (C,), jnp.float32),
        "a1": jnp.float32(0.25),   # torch.nn.PReLU() default init
        # DeconvBlock weights: (Cin, Cout, k, k) as in ConvTranspose2d
        "w2": 0.05 * jax.random.normal(k3, (C, C, K, K), jnp.float32),
        "b2": 0.05 * jax.random.normal(k4, (C,), jnp.float32),
        "a2": jnp.float32(0.25),
        "w3": 0.05 * jax.random.normal(k5, (C, C, K, K), jnp.float32),
        "b3": 0.05 * jax.random.normal(k6, (C,), jnp.float32),
        "a3": jnp.float32(0.25),
    }
    x = jax.random.normal(kx, (N, C, H, W), jnp.float32)

    ref = jax.block_until_ready(ref_forward(x, params))

    fwd = jax.jit(down_block_dbpn,
                  static_argnames=("compute_dtype", "max_k_tile"))

    # f32 operands: parity check.
    out = jax.block_until_ready(fwd(x, params))
    assert out.shape == (N, C, H // 4, W // 4), out.shape
    assert jnp.allclose(out, ref, atol=2e-4, rtol=2e-4), (
        float(jnp.max(jnp.abs(out - ref))))

    # Force the K-tiled accumulator path (>=2 "arbitrary" grid steps).
    out_kt = jax.block_until_ready(fwd(x, params, max_k_tile=128))
    assert jnp.allclose(out_kt, ref, atol=2e-4, rtol=2e-4), (
        float(jnp.max(jnp.abs(out_kt - ref))))

    # bf16 operands (MXU-native on v6e/v7x), f32 accumulate + f32 epilogue.
    out_bf = jax.block_until_ready(fwd(x, params, compute_dtype=jnp.bfloat16))
    assert jnp.allclose(out_bf, ref, atol=6e-2, rtol=6e-2), (
        float(jnp.max(jnp.abs(out_bf - ref))))

    print("KERNEL_OK")
</pallas_src>

<mosaic_0001>
module attributes {stable_mosaic.version = 11 : i64} {
  func.func @_mm_prelu_kernel(%arg0: i32, %arg1: i32, %arg2: memref<2xf32, #tpu.memory_space<smem>>, %arg3: memref<16x256xf32, #tpu.memory_space<vmem>>, %arg4: memref<256x128xf32, #tpu.memory_space<vmem>>, %arg5: memref<1x128xf32, #tpu.memory_space<vmem>>, %arg6: memref<16x128xf32, #tpu.memory_space<vmem>>, %arg7: memref<16x128xf32, #tpu.memory_space<vmem>>) attributes {dimension_semantics = [#tpu.dimension_semantics<parallel>, #tpu.dimension_semantics<arbitrary>], iteration_bounds = array<i64: 2, 1>, scalar_prefetch = 0 : i64, scratch_operands = 1 : i64, tpu.core_type = #tpu.core_type<tc>, window_params = [{transform_indices = @transform_0, window_bounds = array<i64: 2>}, {transform_indices = @transform_1, window_bounds = array<i64: 16, 256>}, {transform_indices = @transform_2, window_bounds = array<i64: 256, 128>}, {pipeline_mode = #tpu.pipeline_mode<synchronous>, transform_indices = @transform_3, window_bounds = array<i64: 1, 128>}, {transform_indices = @transform_4, window_bounds = array<i64: 16, 128>}]} {
    %c0_i32 = arith.constant 0 : i32
    %0 = arith.cmpi eq, %arg1, %c0_i32 : i32
    %1 = arith.extui %0 : i1 to i32
    %c0_i32_0 = arith.constant 0 : i32
    %2 = arith.cmpi ne, %1, %c0_i32_0 : i32
    scf.if %2 {
      %cst_10 = arith.constant 0.000000e+00 : f32
      %12 = vector.broadcast %cst_10 : f32 to vector<16x128xf32>
      %c0_11 = arith.constant 0 : index
      %c0_12 = arith.constant 0 : index
      %13 = vector.load %arg7[%c0_11, %c0_12] : memref<16x128xf32, #tpu.memory_space<vmem>>, vector<16x128xf32>
      tpu.vector_store %arg7[%c0_11, %c0_12], %12 {strides = array<i32>} : memref<16x128xf32, #tpu.memory_space<vmem>>, vector<16x128xf32>,
    } else {
    }
    %c0 = arith.constant 0 : index
    %c0_1 = arith.constant 0 : index
    %3 = vector.load %arg7[%c0, %c0_1] : memref<16x128xf32, #tpu.memory_space<vmem>>, vector<16x128xf32>
    %c0_2 = arith.constant 0 : index
    %c0_3 = arith.constant 0 : index
    %4 = vector.load %arg3[%c0_2, %c0_3] : memref<16x256xf32, #tpu.memory_space<vmem>>, vector<16x256xf32>
    %c0_4 = arith.constant 0 : index
    %c0_5 = arith.constant 0 : index
    %5 = vector.load %arg4[%c0_4, %c0_5] : memref<256x128xf32, #tpu.memory_space<vmem>>, vector<256x128xf32>
    %cst = arith.constant dense<0.000000e+00> : vector<16x128xf32>
    %6 = tpu.matmul %4, %5, %cst {dimension_numbers = #tpu.dot_dimension_numbers<[1], [0], [0], [1], [0, 0, 1, 1], [], []>} : vector<16x256xf32>, vector<256x128xf32>, vector<16x128xf32> -> vector<16x128xf32>
    %7 = arith.addf %3, %6 : vector<16x128xf32>
    %c0_6 = arith.constant 0 : index
    %c0_7 = arith.constant 0 : index
    %8 = vector.load %arg7[%c0_6, %c0_7] : memref<16x128xf32, #tpu.memory_space<vmem>>, vector<16x128xf32>
    tpu.vector_store %arg7[%c0_6, %c0_7], %7 {strides = array<i32>} : memref<16x128xf32, #tpu.memory_space<vmem>>, vector<16x128xf32>,
    %c0_i32_8 = arith.constant 0 : i32
    %9 = arith.cmpi eq, %arg1, %c0_i32_8 : i32
    %10 = arith.extui %9 : i1 to i32
    %c0_i32_9 = arith.constant 0 : i32
    %11 = arith.cmpi ne, %10, %c0_i32_9 : i32
    scf.if %11 {
      %c0_10 = arith.constant 0 : index
      %c0_11 = arith.constant 0 : index
      %12 = vector.load %arg7[%c0_10, %c0_11] : memref<16x128xf32, #tpu.memory_space<vmem>>, vector<16x128xf32>
      %c0_12 = arith.constant 0 : index
      %c0_13 = arith.constant 0 : index
      %13 = vector.load %arg5[%c0_12, %c0_13] : memref<1x128xf32, #tpu.memory_space<vmem>>, vector<1x128xf32>
      %14 = vector.broadcast %13 : vector<1x128xf32> to vector<16x128xf32>
      %15 = arith.addf %12, %14 : vector<16x128xf32>
      %c0_14 = arith.constant 0 : index
      %16 = memref.load %arg2[%c0_14] : memref<2xf32, #tpu.memory_space<smem>>
      %cst_15 = arith.constant 0.000000e+00 : f32
      %17 = vector.broadcast %cst_15 : f32 to vector<16x128xf32>
      %18 = arith.cmpf oge, %15, %17 : vector<16x128xf32>
      %19 = vector.broadcast %16 : f32 to vector<16x128xf32>
      %20 = arith.mulf %19, %15 : vector<16x128xf32>
      %21 = arith.select %18, %15, %20 : vector<16x128xi1>, vector<16x128xf32>
      %c0_16 = arith.constant 0 : index
      %c0_17 = arith.constant 0 : index
      %22 = vector.load %arg6[%c0_16, %c0_17] : memref<16x128xf32, #tpu.memory_space<vmem>>, vector<16x128xf32>
      tpu.vector_store %arg6[%c0_16, %c0_17], %21 {strides = array<i32>} : memref<16x128xf32, #tpu.memory_space<vmem>>, vector<16x128xf32>,
    } else {
    }
    return
  }
  func.func @transform_0(%arg0: i32, %arg1: i32) -> i32 {
    %c0_i32 = arith.constant 0 : i32
    %c0_i32_0 = arith.constant 0 : i32
    return %c0_i32 : i32
  }
  func.func @transform_1(%arg0: i32, %arg1: i32) -> (i32, i32) {
    %c0_i32 = arith.constant 0 : i32
    return %arg0, %arg1 : i32, i32
  }
  func.func @transform_2(%arg0: i32, %arg1: i32) -> (i32, i32) {
    %c0_i32 = arith.constant 0 : i32
    %c0_i32_0 = arith.constant 0 : i32
    return %arg1, %c0_i32 : i32, i32
  }
  func.func @transform_3(%arg0: i32, %arg1: i32) -> (i32, i32) {
    %c0_i32 = arith.constant 0 : i32
    %c0_i32_0 = arith.constant 0 : i32
    %c0_i32_1 = arith.constant 0 : i32
    return %c0_i32, %c0_i32_0 : i32, i32
  }
  func.func @transform_4(%arg0: i32, %arg1: i32) -> (i32, i32) {
    %c0_i32 = arith.constant 0 : i32
    %c0_i32_0 = arith.constant 0 : i32
    return %arg0, %c0_i32 : i32, i32
  }
}

module attributes {stable_mosaic.version = 11 : i64} {
  func.func @_mm_prelu_res_kernel(%arg0: i32, %arg1: i32, %arg2: memref<2xf32, #tpu.memory_space<smem>>, %arg3: memref<16x128xf32, #tpu.memory_space<vmem>>, %arg4: memref<128x128xf32, #tpu.memory_space<vmem>>, %arg5: memref<1x128xf32, #tpu.memory_space<vmem>>, %arg6: memref<16x128xf32, #tpu.memory_space<vmem>>, %arg7: memref<16x128xf32, #tpu.memory_space<vmem>>, %arg8: memref<16x128xf32, #tpu.memory_space<vmem>>) attributes {dimension_semantics = [#tpu.dimension_semantics<parallel>, #tpu.dimension_semantics<arbitrary>], iteration_bounds = array<i64: 2, 1>, scalar_prefetch = 0 : i64, scratch_operands = 1 : i64, tpu.core_type = #tpu.core_type<tc>, window_params = [{transform_indices = @transform_0, window_bounds = array<i64: 2>}, {transform_indices = @transform_1, window_bounds = array<i64: 16, 128>}, {transform_indices = @transform_2, window_bounds = array<i64: 128, 128>}, {pipeline_mode = #tpu.pipeline_mode<synchronous>, transform_indices = @transform_3, window_bounds = array<i64: 1, 128>}, {transform_indices = @transform_4, window_bounds = array<i64: 16, 128>}, {transform_indices = @transform_5, window_bounds = array<i64: 16, 128>}]} {
    %c0_i32 = arith.constant 0 : i32
    %0 = arith.cmpi eq, %arg1, %c0_i32 : i32
    %1 = arith.extui %0 : i1 to i32
    %c0_i32_0 = arith.constant 0 : i32
    %2 = arith.cmpi ne, %1, %c0_i32_0 : i32
    scf.if %2 {
      %cst_10 = arith.constant 0.000000e+00 : f32
      %12 = vector.broadcast %cst_10 : f32 to vector<16x128xf32>
      %c0_11 = arith.constant 0 : index
      %c0_12 = arith.constant 0 : index
      %13 = vector.load %arg8[%c0_11, %c0_12] : memref<16x128xf32, #tpu.memory_space<vmem>>, vector<16x128xf32>
      tpu.vector_store %arg8[%c0_11, %c0_12], %12 {strides = array<i32>} : memref<16x128xf32, #tpu.memory_space<vmem>>, vector<16x128xf32>,
    } else {
    }
    %c0 = arith.constant 0 : index
    %c0_1 = arith.constant 0 : index
    %3 = vector.load %arg8[%c0, %c0_1] : memref<16x128xf32, #tpu.memory_space<vmem>>, vector<16x128xf32>
    %c0_2 = arith.constant 0 : index
    %c0_3 = arith.constant 0 : index
    %4 = vector.load %arg3[%c0_2, %c0_3] : memref<16x128xf32, #tpu.memory_space<vmem>>, vector<16x128xf32>
    %c0_4 = arith.constant 0 : index
    %c0_5 = arith.constant 0 : index
    %5 = vector.load %arg4[%c0_4, %c0_5] : memref<128x128xf32, #tpu.memory_space<vmem>>, vector<128x128xf32>
    %cst = arith.constant dense<0.000000e+00> : vector<16x128xf32>
    %6 = tpu.matmul %4, %5, %cst {dimension_numbers = #tpu.dot_dimension_numbers<[1], [0], [0], [1], [0, 0, 1, 1], [], []>} : vector<16x128xf32>, vector<128x128xf32>, vector<16x128xf32> -> vector<16x128xf32>
    %7 = arith.addf %3, %6 : vector<16x128xf32>
    %c0_6 = arith.constant 0 : index
    %c0_7 = arith.constant 0 : index
    %8 = vector.load %arg8[%c0_6, %c0_7] : memref<16x128xf32, #tpu.memory_space<vmem>>, vector<16x128xf32>
    tpu.vector_store %arg8[%c0_6, %c0_7], %7 {strides = array<i32>} : memref<16x128xf32, #tpu.memory_space<vmem>>, vector<16x128xf32>,
    %c0_i32_8 = arith.constant 0 : i32
    %9 = arith.cmpi eq, %arg1, %c0_i32_8 : i32
    %10 = arith.extui %9 : i1 to i32
    %c0_i32_9 = arith.constant 0 : i32
    %11 = arith.cmpi ne, %10, %c0_i32_9 : i32
    scf.if %11 {
      %c0_10 = arith.constant 0 : index
      %c0_11 = arith.constant 0 : index
      %12 = vector.load %arg8[%c0_10, %c0_11] : memref<16x128xf32, #tpu.memory_space<vmem>>, vector<16x128xf32>
      %c0_12 = arith.constant 0 : index
      %c0_13 = arith.constant 0 : index
      %13 = vector.load %arg5[%c0_12, %c0_13] : memref<1x128xf32, #tpu.memory_space<vmem>>, vector<1x128xf32>
      %14 = vector.broadcast %13 : vector<1x128xf32> to vector<16x128xf32>
      %15 = arith.addf %12, %14 : vector<16x128xf32>
      %c0_14 = arith.constant 0 : index
      %16 = memref.load %arg2[%c0_14] : memref<2xf32, #tpu.memory_space<smem>>
      %cst_15 = arith.constant 0.000000e+00 : f32
      %17 = vector.broadcast %cst_15 : f32 to vector<16x128xf32>
      %18 = arith.cmpf oge, %15, %17 : vector<16x128xf32>
      %19 = vector.broadcast %16 : f32 to vector<16x128xf32>
      %20 = arith.mulf %19, %15 : vector<16x128xf32>
      %21 = arith.select %18, %15, %20 : vector<16x128xi1>, vector<16x128xf32>
      %c1 = arith.constant 1 : index
      %22 = memref.load %arg2[%c1] : memref<2xf32, #tpu.memory_space<smem>>
      %c0_16 = arith.constant 0 : index
      %c0_17 = arith.constant 0 : index
      %23 = vector.load %arg6[%c0_16, %c0_17] : memref<16x128xf32, #tpu.memory_space<vmem>>, vector<16x128xf32>
      %24 = vector.broadcast %22 : f32 to vector<16x128xf32>
      %25 = arith.mulf %24, %23 : vector<16x128xf32>
      %26 = arith.addf %21, %25 : vector<16x128xf32>
      %c0_18 = arith.constant 0 : index
      %c0_19 = arith.constant 0 : index
      %27 = vector.load %arg7[%c0_18, %c0_19] : memref<16x128xf32, #tpu.memory_space<vmem>>, vector<16x128xf32>
      tpu.vector_store %arg7[%c0_18, %c0_19], %26 {strides = array<i32>} : memref<16x128xf32, #tpu.memory_space<vmem>>, vector<16x128xf32>,
    } else {
    }
    return
  }
  func.func @transform_0(%arg0: i32, %arg1: i32) -> i32 {
    %c0_i32 = arith.constant 0 : i32
    %c0_i32_0 = arith.constant 0 : i32
    return %c0_i32 : i32
  }
  func.func @transform_1(%arg0: i32, %arg1: i32) -> (i32, i32) {
    %c0_i32 = arith.constant 0 : i32
    return %arg0, %arg1 : i32, i32
  }
  func.func @transform_2(%arg0: i32, %arg1: i32) -> (i32, i32) {
    %c0_i32 = arith.constant 0 : i32
    %c0_i32_0 = arith.constant 0 : i32
    return %arg1, %c0_i32 : i32, i32
  }
  func.func @transform_3(%arg0: i32, %arg1: i32) -> (i32, i32) {
    %c0_i32 = arith.constant 0 : i32
    %c0_i32_0 = arith.constant 0 : i32
    %c0_i32_1 = arith.constant 0 : i32
    return %c0_i32, %c0_i32_0 : i32, i32
  }
  func.func @transform_4(%arg0: i32, %arg1: i32) -> (i32, i32) {
    %c0_i32 = arith.constant 0 : i32
    %c0_i32_0 = arith.constant 0 : i32
    return %arg0, %c0_i32 : i32, i32
  }
  func.func @transform_5(%arg0: i32, %arg1: i32) -> (i32, i32) {
    %c0_i32 = arith.constant 0 : i32
    %c0_i32_0 = arith.constant 0 : i32
    return %arg0, %c0_i32 : i32, i32
  }
}

module attributes {stable_mosaic.version = 11 : i64} {
  func.func @_mm_prelu_res_kernel(%arg0: i32, %arg1: i32, %arg2: memref<2xf32, #tpu.memory_space<smem>>, %arg3: memref<16x256xf32, #tpu.memory_space<vmem>>, %arg4: memref<256x128xf32, #tpu.memory_space<vmem>>, %arg5: memref<1x128xf32, #tpu.memory_space<vmem>>, %arg6: memref<16x128xf32, #tpu.memory_space<vmem>>, %arg7: memref<16x128xf32, #tpu.memory_space<vmem>>, %arg8: memref<16x128xf32, #tpu.memory_space<vmem>>) attributes {dimension_semantics = [#tpu.dimension_semantics<parallel>, #tpu.dimension_semantics<arbitrary>], iteration_bounds = array<i64: 2, 1>, scalar_prefetch = 0 : i64, scratch_operands = 1 : i64, tpu.core_type = #tpu.core_type<tc>, window_params = [{transform_indices = @transform_0, window_bounds = array<i64: 2>}, {transform_indices = @transform_1, window_bounds = array<i64: 16, 256>}, {transform_indices = @transform_2, window_bounds = array<i64: 256, 128>}, {pipeline_mode = #tpu.pipeline_mode<synchronous>, transform_indices = @transform_3, window_bounds = array<i64: 1, 128>}, {transform_indices = @transform_4, window_bounds = array<i64: 16, 128>}, {transform_indices = @transform_5, window_bounds = array<i64: 16, 128>}]} {
    %c0_i32 = arith.constant 0 : i32
    %0 = arith.cmpi eq, %arg1, %c0_i32 : i32
    %1 = arith.extui %0 : i1 to i32
    %c0_i32_0 = arith.constant 0 : i32
    %2 = arith.cmpi ne, %1, %c0_i32_0 : i32
    scf.if %2 {
      %cst_10 = arith.constant 0.000000e+00 : f32
      %12 = vector.broadcast %cst_10 : f32 to vector<16x128xf32>
      %c0_11 = arith.constant 0 : index
      %c0_12 = arith.constant 0 : index
      %13 = vector.load %arg8[%c0_11, %c0_12] : memref<16x128xf32, #tpu.memory_space<vmem>>, vector<16x128xf32>
      tpu.vector_store %arg8[%c0_11, %c0_12], %12 {strides = array<i32>} : memref<16x128xf32, #tpu.memory_space<vmem>>, vector<16x128xf32>,
    } else {
    }
    %c0 = arith.constant 0 : index
    %c0_1 = arith.constant 0 : index
    %3 = vector.load %arg8[%c0, %c0_1] : memref<16x128xf32, #tpu.memory_space<vmem>>, vector<16x128xf32>
    %c0_2 = arith.constant 0 : index
    %c0_3 = arith.constant 0 : index
    %4 = vector.load %arg3[%c0_2, %c0_3] : memref<16x256xf32, #tpu.memory_space<vmem>>, vector<16x256xf32>
    %c0_4 = arith.constant 0 : index
    %c0_5 = arith.constant 0 : index
    %5 = vector.load %arg4[%c0_4, %c0_5] : memref<256x128xf32, #tpu.memory_space<vmem>>, vector<256x128xf32>
    %cst = arith.constant dense<0.000000e+00> : vector<16x128xf32>
    %6 = tpu.matmul %4, %5, %cst {dimension_numbers = #tpu.dot_dimension_numbers<[1], [0], [0], [1], [0, 0, 1, 1], [], []>} : vector<16x256xf32>, vector<256x128xf32>, vector<16x128xf32> -> vector<16x128xf32>
    %7 = arith.addf %3, %6 : vector<16x128xf32>
    %c0_6 = arith.constant 0 : index
    %c0_7 = arith.constant 0 : index
    %8 = vector.load %arg8[%c0_6, %c0_7] : memref<16x128xf32, #tpu.memory_space<vmem>>, vector<16x128xf32>
    tpu.vector_store %arg8[%c0_6, %c0_7], %7 {strides = array<i32>} : memref<16x128xf32, #tpu.memory_space<vmem>>, vector<16x128xf32>,
    %c0_i32_8 = arith.constant 0 : i32
    %9 = arith.cmpi eq, %arg1, %c0_i32_8 : i32
    %10 = arith.extui %9 : i1 to i32
    %c0_i32_9 = arith.constant 0 : i32
    %11 = arith.cmpi ne, %10, %c0_i32_9 : i32
    scf.if %11 {
      %c0_10 = arith.constant 0 : index
      %c0_11 = arith.constant 0 : index
      %12 = vector.load %arg8[%c0_10, %c0_11] : memref<16x128xf32, #tpu.memory_space<vmem>>, vector<16x128xf32>
      %c0_12 = arith.constant 0 : index
      %c0_13 = arith.constant 0 : index
      %13 = vector.load %arg5[%c0_12, %c0_13] : memref<1x128xf32, #tpu.memory_space<vmem>>, vector<1x128xf32>
      %14 = vector.broadcast %13 : vector<1x128xf32> to vector<16x128xf32>
      %15 = arith.addf %12, %14 : vector<16x128xf32>
      %c0_14 = arith.constant 0 : index
      %16 = memref.load %arg2[%c0_14] : memref<2xf32, #tpu.memory_space<smem>>
      %cst_15 = arith.constant 0.000000e+00 : f32
      %17 = vector.broadcast %cst_15 : f32 to vector<16x128xf32>
      %18 = arith.cmpf oge, %15, %17 : vector<16x128xf32>
      %19 = vector.broadcast %16 : f32 to vector<16x128xf32>
      %20 = arith.mulf %19, %15 : vector<16x128xf32>
      %21 = arith.select %18, %15, %20 : vector<16x128xi1>, vector<16x128xf32>
      %c1 = arith.constant 1 : index
      %22 = memref.load %arg2[%c1] : memref<2xf32, #tpu.memory_space<smem>>
      %c0_16 = arith.constant 0 : index
      %c0_17 = arith.constant 0 : index
      %23 = vector.load %arg6[%c0_16, %c0_17] : memref<16x128xf32, #tpu.memory_space<vmem>>, vector<16x128xf32>
      %24 = vector.broadcast %22 : f32 to vector<16x128xf32>
      %25 = arith.mulf %24, %23 : vector<16x128xf32>
      %26 = arith.addf %21, %25 : vector<16x128xf32>
      %c0_18 = arith.constant 0 : index
      %c0_19 = arith.constant 0 : index
      %27 = vector.load %arg7[%c0_18, %c0_19] : memref<16x128xf32, #tpu.memory_space<vmem>>, vector<16x128xf32>
      tpu.vector_store %arg7[%c0_18, %c0_19], %26 {strides = array<i32>} : memref<16x128xf32, #tpu.memory_space<vmem>>, vector<16x128xf32>,
    } else {
    }
    return
  }
  func.func @transform_0(%arg0: i32, %arg1: i32) -> i32 {
    %c0_i32 = arith.constant 0 : i32
    %c0_i32_0 = arith.constant 0 : i32
    return %c0_i32 : i32
  }
  func.func @transform_1(%arg0: i32, %arg1: i32) -> (i32, i32) {
    %c0_i32 = arith.constant 0 : i32
    return %arg0, %arg1 : i32, i32
  }
  func.func @transform_2(%arg0: i32, %arg1: i32) -> (i32, i32) {
    %c0_i32 = arith.constant 0 : i32
    %c0_i32_0 = arith.constant 0 : i32
    return %arg1, %c0_i32 : i32, i32
  }
  func.func @transform_3(%arg0: i32, %arg1: i32) -> (i32, i32) {
    %c0_i32 = arith.constant 0 : i32
    %c0_i32_0 = arith.constant 0 : i32
    %c0_i32_1 = arith.constant 0 : i32
    return %c0_i32, %c0_i32_0 : i32, i32
  }
  func.func @transform_4(%arg0: i32, %arg1: i32) -> (i32, i32) {
    %c0_i32 = arith.constant 0 : i32
    %c0_i32_0 = arith.constant 0 : i32
    return %arg0, %c0_i32 : i32, i32
  }
  func.func @transform_5(%arg0: i32, %arg1: i32) -> (i32, i32) {
    %c0_i32 = arith.constant 0 : i32
    %c0_i32_0 = arith.constant 0 : i32
    return %arg0, %c0_i32 : i32, i32
  }
}

</mosaic_0001>

<bundles_post_ra>
// kernel: down_block_dbpn.3
= control target key start
LH: loop header
LB: loop body
LE: loop exit
PB: predicated region body
PF: predicated region fallthrough
CT: control target
= control target key end

     0   :  { %9 = vsyncpa [#allocation4], 0  ;;  %s634_s15 = smov 0   ;;  %s636_s16 = smov 0   ;;  %s777_s0 = inlined_call_operand.vmem [shape: f32[2], index: 0, kind: input, shape index: {}]   ;;  %s778_s1 = inlined_call_operand.vmem [shape: f32[32,256], index: 1, kind: input, shape index: {}]   ;;  %s779_s2 = inlined_call_operand.vmem [shape: f32[256,128], index: 2, kind: input, shape index: {}]   ;;  %s780_s3 = inlined_call_operand.vmem [shape: f32[1,128], index: 3, kind: input, shape index: {}]   ;;  %s781_s4 = inlined_call_operand.vmem [shape: f32[32,128], index: 4, kind: output, shape index: {}]  }
   0x1   :  { %s638_s17 = smov 0  }
   0x2 LB: > { %s481_s18 = sadd.s32 4294967295, %s606_s17   ;;  %s27_s19 = sadd.s32 1, %s602_s16  ;;  %s606_s17 = sphi %s638_s17, %s15_s17   ;;  %s602_s16 = sphi %s636_s16, %s783_s16   ;;  %s598_s15 = sphi %s634_s15, %s782_s15  }
   0x3   : > { %p29_p0 = scmp.ge.s32.totalorder %s27_s19, 2  ;;  %p483_p1 = scmp.ge.s32.totalorder %s606_s17, 1 }
   0x4   : > { %p154_p2 = scmp.lt.s32.totalorder %s606_s17, 3  ;;  %p537_p4 = scmp.eq.s32.totalorder %s481_s18, 0 }
   0x5   : > { %s785_s19 = smov (%p29_p0, %s27_s19), 0  ;;  %s166_s22 = sshll.u32 %s777_s0, 4  ;;  %s167_s22 = int_to_ptr.vmem [resolvable:$true] %s166_s22 }
   0x6   : > { %p155_p3 = pnand %p483_p1, %p154_p2  ;;  %s608_s23 = smov [#allocation3]  }
   0x8   : > { %p533_p5 = pneg %p155_p3  ;;  %206 = sbr.rel (%p155_p3) target bundleno = 189 (0xbd), region = 36 }
   0xa   : > { %p534_p6 = pnand %p537_p4, %p533_p5 }
   0xc   : > { %536 = dma.vmem_to_smem (!%p534_p6), %s167_s22, 16, %s608_s23, [#allocation4]  }
   0xd   : > { %593 = dma.done.wait (%p537_p4), [#allocation4], 16  }
   0xe   : > { %595 = vsyncadd (%p537_p4), [#allocation4], 4294967280 }
   0xf   : > { %213 = sfence }
  0x10   : > { %v295_v0 = vld [vmem:[%s779_s2 + $0x78] sm:$0xff]  ;;  %v294_v2 = vld [vmem:[%s779_s2 + $0x70] sm:$0xff]  ;;  %v293_v4 = vld [vmem:[%s779_s2 + $0x68] sm:$0xff]  ;;  %s489_s8 = sshll.u32 %s598_s15, 1  ;;  %s373_s26 = sld [smem:[#allocation3]] }
  0x11   : > { %v311_v1 = vld [vmem:[%s779_s2 + $0xf8] sm:$0xff]  ;;  %497 = vmatpush.msra.mxu2 %v295_v0  ;;  %v310_v3 = vld [vmem:[%s779_s2 + $0xf0] sm:$0xff]  ;;  %312 = vmatpush.msra.mxu0 %v295_v0  ;;  %v309_v5 = vld [vmem:[%s779_s2 + $0xe8] sm:$0xff]  ;;  %p246_p7 = scmp.lt.s32.totalorder %s489_s8, 3 }
  0x12   : > { %513 = vmatpush.msra.mxu3 %v311_v1  ;;  %335 = vmatpush.msra.mxu1 %v311_v1  ;;  %v292_v6 = vld [vmem:[%s779_s2 + $0x60] sm:$0xff]  ;;  %v291_v8 = vld [vmem:[%s779_s2 + $0x58] sm:$0xff]  ;;  %v290_v10 = vld [vmem:[%s779_s2 + $0x50] sm:$0xff] }
  0x13   : > { %498 = vmatpush.msra.mxu2 %v294_v2  ;;  %313 = vmatpush.msra.mxu0 %v294_v2  ;;  %v308_v7 = vld [vmem:[%s779_s2 + $0xe0] sm:$0xff]  ;;  %v307_v9 = vld [vmem:[%s779_s2 + $0xd8] sm:$0xff]  ;;  %v306_v11 = vld [vmem:[%s779_s2 + $0xd0] sm:$0xff]  ;;  %s787_s8 = smov (!%p246_p7, %s489_s8), 3 }
  0x14   : > { %514 = vmatpush.msra.mxu3 %v310_v3  ;;  %336 = vmatpush.msra.mxu1 %v310_v3  ;;  %v289_v12 = vld [vmem:[%s779_s2 + $0x48] sm:$0xff]  ;;  %v288_v14 = vld [vmem:[%s779_s2 + $0x40] sm:$0xff]  ;;  %v287_v16 = vld [vmem:[%s779_s2 + $0x38] sm:$0xff]  ;;  %s496_s6 = sshll.u32 %s787_s8, 4  ;;  %s493_s29 = sshll.u32 %s787_s8, 3 }
  0x15   : > { %499 = vmatpush.msra.mxu2 %v293_v4  ;;  %314 = vmatpush.msra.mxu0 %v293_v4  ;;  %v305_v13 = vld [vmem:[%s779_s2 + $0xc8] sm:$0xff]  ;;  %v304_v15 = vld [vmem:[%s779_s2 + $0xc0] sm:$0xff]  ;;  %v303_v17 = vld [vmem:[%s779_s2 + $0xb8] sm:$0xff]  ;;  %s253_s21 = scalar_lea.vmem %s778_s1, %s496_s6  ;;  %s266_s6 = scalar_lea.vmem %s781_s4, %s493_s29 }
  0x16   : > { %515 = vmatpush.msra.mxu3 %v309_v5  ;;  %337 = vmatpush.msra.mxu1 %v309_v5  ;;  %v286_v18 = vld [vmem:[%s779_s2 + $0x30] sm:$0xff]  ;;  %v285_v20 = vld [vmem:[%s779_s2 + $0x28] sm:$0xff]  ;;  %v284_v22 = vld [vmem:[%s779_s2 + $0x20] sm:$0xff]  ;;  %v376_v40 = vstv %s373_s26 }
  0x17   : > { %500 = vmatpush.msra.mxu2 %v292_v6  ;;  %315 = vmatpush.msra.mxu0 %v292_v6  ;;  %v302_v19 = vld [vmem:[%s779_s2 + $0xb0] sm:$0xff]  ;;  %v301_v21 = vld [vmem:[%s779_s2 + $0xa8] sm:$0xff]  ;;  %v300_v23 = vld [vmem:[%s779_s2 + $0xa0] sm:$0xff] }
  0x18   : > { %516 = vmatpush.msra.mxu3 %v308_v7  ;;  %338 = vmatpush.msra.mxu1 %v308_v7  ;;  %v283_v24 = vld [vmem:[%s779_s2 + $0x18] sm:$0xff]  ;;  %v282_v26 = vld [vmem:[%s779_s2 + $0x10] sm:$0xff]  ;;  %v281_v28 = vld [vmem:[%s779_s2 + $0x8] sm:$0xff] }
  0x19   : > { %501 = vmatpush.msra.mxu2 %v291_v8  ;;  %316 = vmatpush.msra.mxu0 %v291_v8  ;;  %v299_v25 = vld [vmem:[%s779_s2 + $0x98] sm:$0xff]  ;;  %v298_v27 = vld [vmem:[%s779_s2 + $0x90] sm:$0xff]  ;;  %v297_v29 = vld [vmem:[%s779_s2 + $0x88] sm:$0xff] }
  0x1a   : > { %517 = vmatpush.msra.mxu3 %v307_v9  ;;  %339 = vmatpush.msra.mxu1 %v307_v9  ;;  %v280_v30 = vld [vmem:[%s779_s2] sm:$0xff]  ;;  %v278_v32 = vld [vmem:[%s253_s21 + $0x10] sm:$0xff]  ;;  %v279_v33 = vld [vmem:[%s253_s21 + $0x18] sm:$0xff] }
  0x1b   : > { %502 = vmatpush.msra.mxu2 %v290_v10  ;;  %317 = vmatpush.msra.mxu0 %v290_v10  ;;  %v296_v31 = vld [vmem:[%s779_s2 + $0x80] sm:$0xff]  ;;  %v277_v35 = vld [vmem:[%s253_s21 + $0x8] sm:$0xff] }
  0x1c   : > { %518 = vmatpush.msra.mxu3 %v306_v11  ;;  %340 = vmatpush.msra.mxu1 %v306_v11  ;;  %v276_v34 = vld [vmem:[%s253_s21] sm:$0xff] }
  0x1d   : > { %503 = vmatpush.msra.mxu2 %v289_v12  ;;  %318 = vmatpush.msra.mxu0 %v289_v12  ;;  %v564_v36 = vld [vmem:[%s780_s3] ss:$0 sm:$0xff] }
  0x1e   : > { %519 = vmatpush.msra.mxu3 %v305_v13  ;;  %341 = vmatpush.msra.mxu1 %v305_v13 }
  0x1f   : > { %504 = vmatpush.msra.mxu2 %v288_v14  ;;  %319 = vmatpush.msra.mxu0 %v288_v14 }
  0x20   : > { %520 = vmatpush.msra.mxu3 %v304_v15  ;;  %342 = vmatpush.msra.mxu1 %v304_v15 }
  0x21   : > { %505 = vmatpush.msra.mxu2 %v287_v16  ;;  %320 = vmatpush.msra.mxu0 %v287_v16 }
  0x22   : > { %521 = vmatpush.msra.mxu3 %v303_v17  ;;  %343 = vmatpush.msra.mxu1 %v303_v17 }
  0x23   : > { %506 = vmatpush.msra.mxu2 %v286_v18  ;;  %321 = vmatpush.msra.mxu0 %v286_v18 }
  0x24   : > { %522 = vmatpush.msra.mxu3 %v302_v19  ;;  %344 = vmatpush.msra.mxu1 %v302_v19 }
  0x25   : > { %507 = vmatpush.msra.mxu2 %v285_v20  ;;  %322 = vmatpush.msra.mxu0 %v285_v20 }
  0x26   : > { %523 = vmatpush.msra.mxu3 %v301_v21  ;;  %345 = vmatpush.msra.mxu1 %v301_v21 }
  0x27   : > { %508 = vmatpush.msra.mxu2 %v284_v22  ;;  %323 = vmatpush.msra.mxu0 %v284_v22 }
  0x28   : > { %524 = vmatpush.msra.mxu3 %v300_v23  ;;  %346 = vmatpush.msra.mxu1 %v300_v23 }
  0x29   : > { %509 = vmatpush.msra.mxu2 %v283_v24  ;;  %324 = vmatpush.msra.mxu0 %v283_v24 }
  0x2a   : > { %525 = vmatpush.msra.mxu3 %v299_v25  ;;  %347 = vmatpush.msra.mxu1 %v299_v25 }
  0x2b   : > { %510 = vmatpush.msra.mxu2 %v282_v26  ;;  %325 = vmatpush.msra.mxu0 %v282_v26 }
  0x2c   : > { %526 = vmatpush.msra.mxu3 %v298_v27  ;;  %348 = vmatpush.msra.mxu1 %v298_v27 }
  0x2d   : > { %511 = vmatpush.msra.mxu2 %v281_v28  ;;  %326 = vmatpush.msra.mxu0 %v281_v28 }
  0x2e   : > { %527 = vmatpush.msra.mxu3 %v297_v29  ;;  %349 = vmatpush.msra.mxu1 %v297_v29 }
  0x2f   : > { %512 = vmatpush.msra.mxu2 %v280_v30  ;;  %327 = vmatpush.msra.mxu0 %v280_v30 }
  0x30   : > { %528 = vmatpush.msra.mxu3 %v296_v31  ;;  %331 = vmatmul.f32.vlgmr.msra.gmra.mxu2 %v278_v32 }
  0x31   : > { %354 = vmatmul.f32.vlgmr.msra.gmra.mxu3 %v279_v33  ;;  %350 = vmatpush.msra.mxu1 %v296_v31 }
  0x32   : > { %328 = vmatmul.f32.vlgmr.msra.gmra.mxu0 %v276_v34  ;;  %351 = vmatmul.f32.vlgmr.msra.gmra.mxu1 %v277_v35 }
  0xaf   : > { %v329_v37 = vpop.f32.mrf.mxu0  ;;  %v352_v38 = vpop.f32.mrf.mxu1 }
  0xb0   : > { %v353_v39 = vadd.f32 %v352_v38, %v329_v37 }
  0xb2   : > { %v371_v41 = vadd.f32 %v564_v36, %v353_v39 }
  0xb3   : > { %v332_v42 = vpop.f32.mrf.mxu2 }
  0xb4   : > { %v355_v43 = vpop.f32.mrf.mxu3  ;;  %vm374_vm0 = vcmp.ge.f32.partialorder %v371_v41, 0.0  ;;  %v377_v44 = vmul.f32 %v376_v40, %v371_v41 }
  0xb5   : > { %v356_v45 = vadd.f32 %v355_v43, %v332_v42 }
  0xb6   : > { %v379_v46 = vsel %vm374_vm0, %v371_v41, %v377_v44 }
  0xb7   : > { %v372_v47 = vadd.f32 %v564_v36, %v356_v45  ;;  %381 = vst [vmem:[%s266_s6] sm:$0xff] %v379_v46 }
  0xb9   : > { %vm375_vm1 = vcmp.ge.f32.partialorder %v372_v47, 0.0  ;;  %v378_v48 = vmul.f32 %v376_v40, %v372_v47 }
  0xbb   : > { %v380_v49 = vsel %vm375_vm1, %v372_v47, %v378_v48 }
  0xbc   : > { %382 = vst [vmem:[%s266_s6 + $0x8] sm:$0xff] %v380_v49 }
  0xbd PF: > { %s15_s17 = sadd.s32 1, %s606_s17   ;;  %s782_s15 = smov %s602_s16 }
  0xbe   : > { %p12_p8 = scmp.ge.s32.totalorder %s15_s17, 4   ;;  %s783_s16 = smov %s785_s19 }
  0xc0   :  { %14 = sbr.rel (!%p12_p8) target bundleno = 2 (0x2), region = 82 }
  0xc5   :  { %405 = vsyncpa [#allocation4], 1 }
  0xc6   :  { %407 = vsyncpa [#allocation4 + $0x1], 1 }

// kernel: tile.8
= control target key start
LH: loop header
LB: loop body
LE: loop exit
PB: predicated region body
PF: predicated region fallthrough
CT: control target
= control target key end

     0   :  { %s28_s0 = inlined_call_operand.vmem [shape: f32[4], index: 0, kind: input, shape index: {}]   ;;  %s29_s1 = inlined_call_operand.vmem [shape: f32[16,4], index: 1, kind: output, shape index: {}]  }
   0x1   :  { %v4_v0 = vld [vmem:[%s28_s0] ss:$0 sm:$0xff] }
   0x2   :  { %5 = vst [vmem:[%s29_s1] sm:$0xff] %v4_v0 }
   0x3   :  { %8 = vst [vmem:[%s29_s1 + $0x8] sm:$0xff] %v4_v0 }

// kernel: tile.9
= control target key start
LH: loop header
LB: loop body
LE: loop exit
PB: predicated region body
PF: predicated region fallthrough
CT: control target
= control target key end

     0   :  { %s131_s10 = smov 60   ;;  %s132_s11 = smov 52   ;;  %vm3_vm0 = vcmask 31744   ;;  %vm9_vm1 = vcmask 523744   ;;  %vm15_vm2 = vcmask 490944   ;;  %vm21_vm3 = vcmask 458144   ;;  %s207_s0 = inlined_call_operand.vmem [shape: f32[16,4], index: 0, kind: input, shape index: {}]   ;;  %s208_s1 = inlined_call_operand.vmem [shape: f32[64], index: 1, kind: output, shape index: {}]  }
   0x1   :  { %v101_v0 = vld [vmem:[%s207_s0 + $0xf] sm:$0x1]   ;;  %v103_v1 = vld [vmem:[%s207_s0 + $0xd] sm:$0x1]   ;;  %v105_v2 = vld [vmem:[%s207_s0 + $0xb] sm:$0x1]  }
   0x2   :  { %7 = vrot.lane.b32.xlu0 %v101_v0, %s131_s10  ;;  %19 = vrot.lane.b32.xlu1 %v103_v1, %s132_s11  ;;  %s133_s14 = smov 44   ;;  %v102_v3 = vld [vmem:[%s207_s0 + $0xe] sm:$0x1]   ;;  %v104_v4 = vld [vmem:[%s207_s0 + $0xc] sm:$0x1]   ;;  %s134_s19 = smov 56  }
   0x3   :  { %31 = vrot.lane.b32.xlu2 %v105_v2, %s133_s14  ;;  %s135_s20 = smov 48   ;;  %v106_v5 = vld [vmem:[%s207_s0 + $0xa] sm:$0x1]   ;;  %s136_s23 = smov 40   ;;  %v107_v6 = vld [vmem:[%s207_s0 + $0x9] sm:$0x1]  }
   0x4   :  { %v108_v7 = vld [vmem:[%s207_s0 + $0x8] sm:$0x1]   ;;  %s137_s28 = smov 36   ;;  %s138_s29 = smov 32   ;;  %v109_v8 = vld [vmem:[%s207_s0 + $0x7] sm:$0x1]  }
   0x5   :  { %s139_s3 = smov 28   ;;  %v110_v9 = vld [vmem:[%s207_s0 + $0x6] sm:$0x1]   ;;  %v111_v10 = vld [vmem:[%s207_s0 + $0x5] sm:$0x1]   ;;  %s140_s8 = smov 24  }
   0x6   :  { %s141_s9 = smov 20   ;;  %v112_v11 = vld [vmem:[%s207_s0 + $0x4] sm:$0x1]   ;;  %s142_s12 = smov 16   ;;  %v113_v12 = vld [vmem:[%s207_s0 + $0x3] sm:$0x1]  }
   0x7   :  { %v114_v13 = vld [vmem:[%s207_s0 + $0x2] sm:$0x1]   ;;  %s143_s17 = smov 12   ;;  %s144_s18 = smov 8   ;;  %v115_v14 = vld [vmem:[%s207_s0 + $0x1] sm:$0x1]  }
   0x8   :  { %s145_s21 = smov 4   ;;  %v2_v15 = vld [vmem:[%s207_s0] sm:$0x1]   ;;  %vm27_vm4 = vcmask 425344   ;;  %vm33_vm5 = vcmask 392544   ;;  %vm39_vm6 = vcmask 359744  }
   0x9   :  { %4 = vst.msk [vmem:[#allocation0] sm:$0x1] %vm3_vm0, %v2_v15   ;;  %vm45_vm7 = vcmask 326944   ;;  %vm51_vm8 = vcmask 294144   ;;  %vm57_vm9 = vcmask 261344   ;;  %vm63_vm10 = vcmask 228544  }
   0xa   :  { %13 = vrot.lane.b32.xlu0 %v102_v3, %s134_s19  ;;  %25 = vrot.lane.b32.xlu1 %v104_v4, %s135_s20  ;;  %vm69_vm11 = vcmask 195744   ;;  %vm75_vm12 = vcmask 162944   ;;  %vm81_vm13 = vcmask 130144   ;;  %vm87_vm14 = vcmask 97344  }
   0xb   :  { %37 = vrot.lane.b32.xlu2 %v106_v5, %s136_s23  ;;  %vm93_vm15 = vcmask 64544  }
  0x12   :  { %43 = vrot.lane.b32.xlu0 %v107_v6, %s137_s28  ;;  %49 = vrot.lane.b32.xlu1 %v108_v7, %s138_s29 }
  0x13   :  { %55 = vrot.lane.b32.xlu2 %v109_v8, %s139_s3 }
  0x1a   :  { %61 = vrot.lane.b32.xlu0 %v110_v9, %s140_s8  ;;  %67 = vrot.lane.b32.xlu1 %v111_v10, %s141_s9 }
  0x1b   :  { %73 = vrot.lane.b32.xlu2 %v112_v11, %s142_s12 }
  0x22   :  { %79 = vrot.lane.b32.xlu0 %v113_v12, %s143_s17  ;;  %85 = vrot.lane.b32.xlu1 %v114_v13, %s144_s18 }
  0x23   :  { %91 = vrot.lane.b32.xlu2 %v115_v14, %s145_s21 }
  0x5d   :  { %v32_v16 = vpop.permute.xlu2 %31  }
  0x65   :  { %v38_v17 = vpop.permute.xlu2 %37  }
  0x6d   :  { %v56_v18 = vpop.permute.xlu2 %55  }
  0x74   :  { %v8_v19 = vpop.permute.xlu0 %7   ;;  %v20_v20 = vpop.permute.xlu1 %19  }
  0x75   :  { %10 = vst.msk [vmem:[#allocation0] sm:$0x1] %vm9_vm1, %v8_v19   ;;  %v74_v21 = vpop.permute.xlu2 %73  }
  0x7c   :  { %v14_v22 = vpop.permute.xlu0 %13   ;;  %v26_v23 = vpop.permute.xlu1 %25  }
  0x7d   :  { %16 = vst.msk [vmem:[#allocation0] sm:$0x1] %vm15_vm2, %v14_v22   ;;  %v92_v24 = vpop.permute.xlu2 %91  }
  0x7e   :  { %22 = vst.msk [vmem:[#allocation0] sm:$0x1] %vm21_vm3, %v20_v20  }
  0x7f   :  { %28 = vst.msk [vmem:[#allocation0] sm:$0x1] %vm27_vm4, %v26_v23  }
  0x80   :  { %34 = vst.msk [vmem:[#allocation0] sm:$0x1] %vm33_vm5, %v32_v16  }
  0x81   :  { %40 = vst.msk [vmem:[#allocation0] sm:$0x1] %vm39_vm6, %v38_v17  }
  0x84   :  { %v44_v25 = vpop.permute.xlu0 %43   ;;  %v50_v26 = vpop.permute.xlu1 %49  }
  0x85   :  { %46 = vst.msk [vmem:[#allocation0] sm:$0x1] %vm45_vm7, %v44_v25  }
  0x86   :  { %52 = vst.msk [vmem:[#allocation0] sm:$0x1] %vm51_vm8, %v50_v26  }
  0x87   :  { %58 = vst.msk [vmem:[#allocation0] sm:$0x1] %vm57_vm9, %v56_v18  }
  0x8c   :  { %v62_v27 = vpop.permute.xlu0 %61   ;;  %v68_v28 = vpop.permute.xlu1 %67  }
  0x8d   :  { %64 = vst.msk [vmem:[#allocation0] sm:$0x1] %vm63_vm10, %v62_v27  }
  0x8e   :  { %70 = vst.msk [vmem:[#allocation0] sm:$0x1] %vm69_vm11, %v68_v28  }
  0x8f   :  { %76 = vst.msk [vmem:[#allocation0] sm:$0x1] %vm75_vm12, %v74_v21  }
  0x94   :  { %v80_v29 = vpop.permute.xlu0 %79   ;;  %v86_v30 = vpop.permute.xlu1 %85  }
  0x95   :  { %82 = vst.msk [vmem:[#allocation0] sm:$0x1] %vm81_vm13, %v80_v29  }
  0x96   :  { %88 = vst.msk [vmem:[#allocation0] sm:$0x1] %vm87_vm14, %v86_v30  }
  0x97   :  { %94 = vst.msk [vmem:[#allocation0] sm:$0x1] %vm93_vm15, %v92_v24  }
  0x9e   :  { %v97_v31 = vld [vmem:[#allocation0] sm:$0x1] }
  0x9f   :  { %100 = vst [vmem:[%s208_s1] sm:$0x1] %v97_v31 }

// kernel: down_block_dbpn.4
= control target key start
LH: loop header
LB: loop body
LE: loop exit
PB: predicated region body
PF: predicated region fallthrough
CT: control target
= control target key end

     0   :  { %10 = vsyncpa [#allocation4], 0  ;;  %s641_s18 = smov 0   ;;  %s643_s19 = smov 0   ;;  %s740_s0 = inlined_call_operand.vmem [shape: f32[2], index: 0, kind: input, shape index: {}]   ;;  %s741_s1 = inlined_call_operand.vmem [shape: f32[32,128], index: 1, kind: input, shape index: {}]   ;;  %s742_s2 = inlined_call_operand.vmem [shape: f32[128,128], index: 2, kind: input, shape index: {}]   ;;  %s743_s3 = inlined_call_operand.vmem [shape: f32[1,128], index: 3, kind: input, shape index: {}]   ;;  %s744_s4 = inlined_call_operand.vmem [shape: f32[32,128], index: 4, kind: input, shape index: {}]   ;;  %s745_s5 = inlined_call_operand.vmem [shape: f32[32,128], index: 5, kind: output, shape index: {}]  }
   0x1   :  { %s645_s20 = smov 0  }
   0x2 LB: > { %s498_s21 = sadd.s32 4294967295, %s608_s20   ;;  %s28_s22 = sadd.s32 1, %s604_s19  ;;  %s608_s20 = sphi %s645_s20, %s16_s20   ;;  %s604_s19 = sphi %s643_s19, %s747_s19   ;;  %s600_s18 = sphi %s641_s18, %s746_s18  }
   0x3   : > { %p30_p0 = scmp.ge.s32.totalorder %s28_s22, 2  ;;  %p500_p1 = scmp.ge.s32.totalorder %s608_s20, 1 }
   0x4   : > { %p181_p2 = scmp.lt.s32.totalorder %s608_s20, 3  ;;  %p539_p4 = scmp.eq.s32.totalorder %s498_s21, 0 }
   0x5   : > { %s749_s22 = smov (%p30_p0, %s28_s22), 0  ;;  %s193_s25 = sshll.u32 %s740_s0, 4  ;;  %s194_s25 = int_to_ptr.vmem [resolvable:$true] %s193_s25 }
   0x6   : > { %p182_p3 = pnand %p500_p1, %p181_p2  ;;  %s610_s26 = smov [#allocation3]  }
   0x8   : > { %p535_p5 = pneg %p182_p3  ;;  %239 = sbr.rel (%p182_p3) target bundleno = 183 (0xb7), region = 40 }
   0xa   : > { %p536_p6 = pnand %p539_p4, %p535_p5 }
   0xc   : > { %538 = dma.vmem_to_smem (!%p536_p6), %s194_s25, 16, %s610_s26, [#allocation4]  }
   0xd   : > { %595 = dma.done.wait (%p539_p4), [#allocation4], 16  }
   0xe   : > { %597 = vsyncadd (%p539_p4), [#allocation4], 4294967280 }
   0xf   : > { %246 = sfence }
  0x10   : > { %v334_v0 = vld [vmem:[%s742_s2 + $0x78] sm:$0xff]  ;;  %v333_v1 = vld [vmem:[%s742_s2 + $0x70] sm:$0xff]  ;;  %v332_v2 = vld [vmem:[%s742_s2 + $0x68] sm:$0xff]  ;;  %s506_s21 = sshll.u32 %s600_s18, 1  ;;  %s512_s17 = sld [smem:[#allocation3 + $0x1]] }
  0x11   : > { %335 = vmatpush.msra.mxu0 %v334_v0  ;;  %515 = vmatpush.msra.mxu1 %v334_v0  ;;  %v331_v3 = vld [vmem:[%s742_s2 + $0x60] sm:$0xff]  ;;  %v330_v4 = vld [vmem:[%s742_s2 + $0x58] sm:$0xff]  ;;  %v329_v5 = vld [vmem:[%s742_s2 + $0x50] sm:$0xff]  ;;  %p283_p7 = scmp.lt.s32.totalorder %s506_s21, 3 }
  0x12   : > { %v328_v6 = vld [vmem:[%s742_s2 + $0x48] sm:$0xff]  ;;  %v327_v7 = vld [vmem:[%s742_s2 + $0x40] sm:$0xff]  ;;  %v326_v8 = vld [vmem:[%s742_s2 + $0x38] sm:$0xff] }
  0x13   : > { %336 = vmatpush.msra.mxu0 %v333_v1  ;;  %516 = vmatpush.msra.mxu1 %v333_v1  ;;  %v325_v9 = vld [vmem:[%s742_s2 + $0x30] sm:$0xff]  ;;  %v324_v10 = vld [vmem:[%s742_s2 + $0x28] sm:$0xff]  ;;  %s751_s21 = smov (!%p283_p7, %s506_s21), 3  ;;  %v323_v11 = vld [vmem:[%s742_s2 + $0x20] sm:$0xff] }
  0x14   : > { %v322_v12 = vld [vmem:[%s742_s2 + $0x18] sm:$0xff]  ;;  %s705_s7 = sshll.u32 %s751_s21, 3  ;;  %v321_v13 = vld [vmem:[%s742_s2 + $0x10] sm:$0xff]  ;;  %v320_v14 = vld [vmem:[%s742_s2 + $0x8] sm:$0xff]  ;;  %s373_s21 = sld [smem:[#allocation3]] }
  0x15   : > { %337 = vmatpush.msra.mxu0 %v332_v2  ;;  %517 = vmatpush.msra.mxu1 %v332_v2  ;;  %s289_s14 = scalar_lea.vmem %s741_s1, %s705_s7  ;;  %v319_v15 = vld [vmem:[%s742_s2] sm:$0xff]  ;;  %s301_s25 = scalar_lea.vmem %s744_s4, %s705_s7 }
  0x16   : > { %v317_v16 = vld [vmem:[%s289_s14] sm:$0xff]  ;;  %v318_v17 = vld [vmem:[%s289_s14 + $0x8] sm:$0xff]  ;;  %v384_v21 = vstv %s512_s17  ;;  %s307_s29 = scalar_lea.vmem %s745_s5, %s705_s7 }
  0x17   : > { %338 = vmatpush.msra.mxu0 %v331_v3  ;;  %518 = vmatpush.msra.mxu1 %v331_v3  ;;  %v566_v18 = vld [vmem:[%s743_s3] ss:$0 sm:$0xff]  ;;  %v383_v20 = vld [vmem:[%s301_s25 + $0x8] sm:$0xff] }
  0x18   : > { %v382_v19 = vld [vmem:[%s301_s25] sm:$0xff]  ;;  %v386_v28 = vmul.f32 %v384_v21, %v383_v20 }
  0x19   : > { %339 = vmatpush.msra.mxu0 %v330_v4  ;;  %519 = vmatpush.msra.mxu1 %v330_v4  ;;  %v385_v27 = vmul.f32 %v384_v21, %v382_v19 }
  0x1a   : > { %v376_v23 = vstv %s373_s21 }
  0x1b   : > { %340 = vmatpush.msra.mxu0 %v329_v5  ;;  %520 = vmatpush.msra.mxu1 %v329_v5 }
  0x1d   : > { %341 = vmatpush.msra.mxu0 %v328_v6  ;;  %521 = vmatpush.msra.mxu1 %v328_v6 }
  0x1f   : > { %342 = vmatpush.msra.mxu0 %v327_v7  ;;  %522 = vmatpush.msra.mxu1 %v327_v7 }
  0x21   : > { %343 = vmatpush.msra.mxu0 %v326_v8  ;;  %523 = vmatpush.msra.mxu1 %v326_v8 }
  0x23   : > { %344 = vmatpush.msra.mxu0 %v325_v9  ;;  %524 = vmatpush.msra.mxu1 %v325_v9 }
  0x25   : > { %345 = vmatpush.msra.mxu0 %v324_v10  ;;  %525 = vmatpush.msra.mxu1 %v324_v10 }
  0x27   : > { %346 = vmatpush.msra.mxu0 %v323_v11  ;;  %526 = vmatpush.msra.mxu1 %v323_v11 }
  0x29   : > { %347 = vmatpush.msra.mxu0 %v322_v12  ;;  %527 = vmatpush.msra.mxu1 %v322_v12 }
  0x2b   : > { %348 = vmatpush.msra.mxu0 %v321_v13  ;;  %528 = vmatpush.msra.mxu1 %v321_v13 }
  0x2d   : > { %349 = vmatpush.msra.mxu0 %v320_v14  ;;  %529 = vmatpush.msra.mxu1 %v320_v14 }
  0x2f   : > { %350 = vmatpush.msra.mxu0 %v319_v15  ;;  %530 = vmatpush.msra.mxu1 %v319_v15 }
  0x30   : > { %351 = vmatmul.f32.vlgmr.msra.gmra.mxu0 %v317_v16  ;;  %354 = vmatmul.f32.vlgmr.msra.gmra.mxu1 %v318_v17 }
  0xad   : > { %v352_v22 = vpop.f32.mrf.mxu0  ;;  %v355_v24 = vpop.f32.mrf.mxu1 }
  0xae   : > { %v371_v25 = vadd.f32 %v566_v18, %v352_v22  ;;  %v372_v26 = vadd.f32 %v566_v18, %v355_v24 }
  0xb0   : > { %vm374_vm0 = vcmp.ge.f32.partialorder %v371_v25, 0.0  ;;  %v377_v29 = vmul.f32 %v376_v23, %v371_v25  ;;  %vm375_vm1 = vcmp.ge.f32.partialorder %v372_v26, 0.0  ;;  %v378_v30 = vmul.f32 %v376_v23, %v372_v26 }
  0xb2   : > { %v379_v31 = vsel %vm374_vm0, %v371_v25, %v377_v29  ;;  %v380_v32 = vsel %vm375_vm1, %v372_v26, %v378_v30 }
  0xb3   : > { %v387_v33 = vadd.f32 %v385_v27, %v379_v31  ;;  %v388_v34 = vadd.f32 %v386_v28, %v380_v32 }
  0xb5   : > { %389 = vst [vmem:[%s307_s29] sm:$0xff] %v387_v33 }
  0xb6   : > { %390 = vst [vmem:[%s307_s29 + $0x8] sm:$0xff] %v388_v34 }
  0xb7 PF: > { %s16_s20 = sadd.s32 1, %s608_s20   ;;  %s746_s18 = smov %s604_s19 }
  0xb8   : > { %p13_p8 = scmp.ge.s32.totalorder %s16_s20, 4   ;;  %s747_s19 = smov %s749_s22 }
  0xba   :  { %15 = sbr.rel (!%p13_p8) target bundleno = 2 (0x2), region = 89 }
  0xbf   :  { %413 = vsyncpa [#allocation4], 1 }
  0xc0   :  { %415 = vsyncpa [#allocation4 + $0x1], 1 }

// kernel: down_block_dbpn.5
= control target key start
LH: loop header
LB: loop body
LE: loop exit
PB: predicated region body
PF: predicated region fallthrough
CT: control target
= control target key end

     0   :  { %10 = vsyncpa [#allocation4], 0  ;;  %s711_s18 = smov 0   ;;  %s713_s19 = smov 0   ;;  %s857_s0 = inlined_call_operand.vmem [shape: f32[2], index: 0, kind: input, shape index: {}]   ;;  %s858_s1 = inlined_call_operand.vmem [shape: f32[32,256], index: 1, kind: input, shape index: {}]   ;;  %s859_s2 = inlined_call_operand.vmem [shape: f32[256,128], index: 2, kind: input, shape index: {}]   ;;  %s860_s3 = inlined_call_operand.vmem [shape: f32[1,128], index: 3, kind: input, shape index: {}]   ;;  %s861_s4 = inlined_call_operand.vmem [shape: f32[32,128], index: 4, kind: input, shape index: {}]   ;;  %s862_s5 = inlined_call_operand.vmem [shape: f32[32,128], index: 5, kind: output, shape index: {}]  }
   0x1   :  { %s715_s20 = smov 0  }
   0x2 LB: > { %s550_s21 = sadd.s32 4294967295, %s678_s20   ;;  %s28_s22 = sadd.s32 1, %s674_s19  ;;  %s678_s20 = sphi %s715_s20, %s16_s20   ;;  %s674_s19 = sphi %s713_s19, %s864_s19   ;;  %s670_s18 = sphi %s711_s18, %s863_s18  }
   0x3   : > { %p30_p0 = scmp.ge.s32.totalorder %s28_s22, 2  ;;  %p552_p1 = scmp.ge.s32.totalorder %s678_s20, 1 }
   0x4   : > { %p181_p2 = scmp.lt.s32.totalorder %s678_s20, 3  ;;  %p609_p4 = scmp.eq.s32.totalorder %s550_s21, 0 }
   0x5   : > { %s866_s22 = smov (%p30_p0, %s28_s22), 0  ;;  %s193_s25 = sshll.u32 %s857_s0, 4  ;;  %s194_s25 = int_to_ptr.vmem [resolvable:$true] %s193_s25 }
   0x6   : > { %p182_p3 = pnand %p552_p1, %p181_p2  ;;  %s680_s26 = smov [#allocation3]  }
   0x8   : > { %p605_p5 = pneg %p182_p3  ;;  %242 = sbr.rel (%p182_p3) target bundleno = 191 (0xbf), region = 40 }
   0xa   : > { %p606_p6 = pnand %p609_p4, %p605_p5 }
   0xc   : > { %608 = dma.vmem_to_smem (!%p606_p6), %s194_s25, 16, %s680_s26, [#allocation4]  }
   0xd   : > { %665 = dma.done.wait (%p609_p4), [#allocation4], 16  }
   0xe   : > { %667 = vsyncadd (%p609_p4), [#allocation4], 4294967280 }
   0xf   : > { %249 = sfence }
  0x10   : > { %v344_v0 = vld [vmem:[%s859_s2 + $0x78] sm:$0xff]  ;;  %v343_v2 = vld [vmem:[%s859_s2 + $0x70] sm:$0xff]  ;;  %v342_v4 = vld [vmem:[%s859_s2 + $0x68] sm:$0xff]  ;;  %s558_s13 = sshll.u32 %s670_s18, 1  ;;  %s565_s7 = sld [smem:[#allocation3 + $0x1]] }
  0x11   : > { %v360_v1 = vld [vmem:[%s859_s2 + $0xf8] sm:$0xff]  ;;  %569 = vmatpush.msra.mxu2 %v344_v0  ;;  %v359_v3 = vld [vmem:[%s859_s2 + $0xf0] sm:$0xff]  ;;  %361 = vmatpush.msra.mxu0 %v344_v0  ;;  %v358_v5 = vld [vmem:[%s859_s2 + $0xe8] sm:$0xff]  ;;  %p289_p7 = scmp.lt.s32.totalorder %s558_s13, 3  ;;  %s422_s8 = sld [smem:[#allocation3]] }
  0x12   : > { %585 = vmatpush.msra.mxu3 %v360_v1  ;;  %384 = vmatpush.msra.mxu1 %v360_v1  ;;  %v341_v6 = vld [vmem:[%s859_s2 + $0x60] sm:$0xff]  ;;  %v340_v8 = vld [vmem:[%s859_s2 + $0x58] sm:$0xff]  ;;  %v339_v10 = vld [vmem:[%s859_s2 + $0x50] sm:$0xff] }
  0x13   : > { %570 = vmatpush.msra.mxu2 %v343_v2  ;;  %362 = vmatpush.msra.mxu0 %v343_v2  ;;  %v357_v7 = vld [vmem:[%s859_s2 + $0xe0] sm:$0xff]  ;;  %v356_v9 = vld [vmem:[%s859_s2 + $0xd8] sm:$0xff]  ;;  %v355_v11 = vld [vmem:[%s859_s2 + $0xd0] sm:$0xff]  ;;  %s868_s13 = smov (!%p289_p7, %s558_s13), 3 }
  0x14   : > { %586 = vmatpush.msra.mxu3 %v359_v3  ;;  %385 = vmatpush.msra.mxu1 %v359_v3  ;;  %v338_v12 = vld [vmem:[%s859_s2 + $0x48] sm:$0xff]  ;;  %v337_v14 = vld [vmem:[%s859_s2 + $0x40] sm:$0xff]  ;;  %v336_v16 = vld [vmem:[%s859_s2 + $0x38] sm:$0xff]  ;;  %s568_s12 = sshll.u32 %s868_s13, 4  ;;  %s562_s9 = sshll.u32 %s868_s13, 3 }
  0x15   : > { %571 = vmatpush.msra.mxu2 %v342_v4  ;;  %363 = vmatpush.msra.mxu0 %v342_v4  ;;  %v354_v13 = vld [vmem:[%s859_s2 + $0xc8] sm:$0xff]  ;;  %v353_v15 = vld [vmem:[%s859_s2 + $0xc0] sm:$0xff]  ;;  %v352_v17 = vld [vmem:[%s859_s2 + $0xb8] sm:$0xff]  ;;  %s296_s27 = scalar_lea.vmem %s858_s1, %s568_s12  ;;  %s309_s12 = scalar_lea.vmem %s861_s4, %s562_s9 }
  0x16   : > { %587 = vmatpush.msra.mxu3 %v358_v5  ;;  %386 = vmatpush.msra.mxu1 %v358_v5  ;;  %v335_v18 = vld [vmem:[%s859_s2 + $0x30] sm:$0xff]  ;;  %v334_v20 = vld [vmem:[%s859_s2 + $0x28] sm:$0xff]  ;;  %v333_v22 = vld [vmem:[%s859_s2 + $0x20] sm:$0xff]  ;;  %v433_v41 = vstv %s565_s7  ;;  %s315_s17 = scalar_lea.vmem %s862_s5, %s562_s9 }
  0x17   : > { %572 = vmatpush.msra.mxu2 %v341_v6  ;;  %364 = vmatpush.msra.mxu0 %v341_v6  ;;  %v351_v19 = vld [vmem:[%s859_s2 + $0xb0] sm:$0xff]  ;;  %v350_v21 = vld [vmem:[%s859_s2 + $0xa8] sm:$0xff]  ;;  %v349_v23 = vld [vmem:[%s859_s2 + $0xa0] sm:$0xff]  ;;  %v425_v42 = vstv %s422_s8 }
  0x18   : > { %588 = vmatpush.msra.mxu3 %v357_v7  ;;  %387 = vmatpush.msra.mxu1 %v357_v7  ;;  %v332_v24 = vld [vmem:[%s859_s2 + $0x18] sm:$0xff]  ;;  %v331_v26 = vld [vmem:[%s859_s2 + $0x10] sm:$0xff]  ;;  %v330_v28 = vld [vmem:[%s859_s2 + $0x8] sm:$0xff] }
  0x19   : > { %573 = vmatpush.msra.mxu2 %v340_v8  ;;  %365 = vmatpush.msra.mxu0 %v340_v8  ;;  %v348_v25 = vld [vmem:[%s859_s2 + $0x98] sm:$0xff]  ;;  %v347_v27 = vld [vmem:[%s859_s2 + $0x90] sm:$0xff]  ;;  %v346_v29 = vld [vmem:[%s859_s2 + $0x88] sm:$0xff] }
  0x1a   : > { %589 = vmatpush.msra.mxu3 %v356_v9  ;;  %388 = vmatpush.msra.mxu1 %v356_v9  ;;  %v329_v30 = vld [vmem:[%s859_s2] sm:$0xff]  ;;  %v327_v32 = vld [vmem:[%s296_s27 + $0x10] sm:$0xff]  ;;  %v328_v33 = vld [vmem:[%s296_s27 + $0x18] sm:$0xff] }
  0x1b   : > { %574 = vmatpush.msra.mxu2 %v339_v10  ;;  %366 = vmatpush.msra.mxu0 %v339_v10  ;;  %v345_v31 = vld [vmem:[%s859_s2 + $0x80] sm:$0xff]  ;;  %v326_v35 = vld [vmem:[%s296_s27 + $0x8] sm:$0xff] }
  0x1c   : > { %590 = vmatpush.msra.mxu3 %v355_v11  ;;  %389 = vmatpush.msra.mxu1 %v355_v11  ;;  %v325_v34 = vld [vmem:[%s296_s27] sm:$0xff]  ;;  %v432_v47 = vld [vmem:[%s309_s12 + $0x8] sm:$0xff] }
  0x1d   : > { %575 = vmatpush.msra.mxu2 %v338_v12  ;;  %367 = vmatpush.msra.mxu0 %v338_v12  ;;  %v636_v36 = vld [vmem:[%s860_s3] ss:$0 sm:$0xff]  ;;  %v435_v53 = vmul.f32 %v433_v41, %v432_v47 }
  0x1e   : > { %591 = vmatpush.msra.mxu3 %v354_v13  ;;  %390 = vmatpush.msra.mxu1 %v354_v13  ;;  %v431_v39 = vld [vmem:[%s309_s12] sm:$0xff] }
  0x1f   : > { %576 = vmatpush.msra.mxu2 %v337_v14  ;;  %368 = vmatpush.msra.mxu0 %v337_v14  ;;  %v434_v44 = vmul.f32 %v433_v41, %v431_v39 }
  0x20   : > { %592 = vmatpush.msra.mxu3 %v353_v15  ;;  %391 = vmatpush.msra.mxu1 %v353_v15 }
  0x21   : > { %577 = vmatpush.msra.mxu2 %v336_v16  ;;  %369 = vmatpush.msra.mxu0 %v336_v16 }
  0x22   : > { %593 = vmatpush.msra.mxu3 %v352_v17  ;;  %392 = vmatpush.msra.mxu1 %v352_v17 }
  0x23   : > { %578 = vmatpush.msra.mxu2 %v335_v18  ;;  %370 = vmatpush.msra.mxu0 %v335_v18 }
  0x24   : > { %594 = vmatpush.msra.mxu3 %v351_v19  ;;  %393 = vmatpush.msra.mxu1 %v351_v19 }
  0x25   : > { %579 = vmatpush.msra.mxu2 %v334_v20  ;;  %371 = vmatpush.msra.mxu0 %v334_v20 }
  0x26   : > { %595 = vmatpush.msra.mxu3 %v350_v21  ;;  %394 = vmatpush.msra.mxu1 %v350_v21 }
  0x27   : > { %580 = vmatpush.msra.mxu2 %v333_v22  ;;  %372 = vmatpush.msra.mxu0 %v333_v22 }
  0x28   : > { %596 = vmatpush.msra.mxu3 %v349_v23  ;;  %395 = vmatpush.msra.mxu1 %v349_v23 }
  0x29   : > { %581 = vmatpush.msra.mxu2 %v332_v24  ;;  %373 = vmatpush.msra.mxu0 %v332_v24 }
  0x2a   : > { %597 = vmatpush.msra.mxu3 %v348_v25  ;;  %396 = vmatpush.msra.mxu1 %v348_v25 }
  0x2b   : > { %582 = vmatpush.msra.mxu2 %v331_v26  ;;  %374 = vmatpush.msra.mxu0 %v331_v26 }
  0x2c   : > { %598 = vmatpush.msra.mxu3 %v347_v27  ;;  %397 = vmatpush.msra.mxu1 %v347_v27 }
  0x2d   : > { %583 = vmatpush.msra.mxu2 %v330_v28  ;;  %375 = vmatpush.msra.mxu0 %v330_v28 }
  0x2e   : > { %599 = vmatpush.msra.mxu3 %v346_v29  ;;  %398 = vmatpush.msra.mxu1 %v346_v29 }
  0x2f   : > { %584 = vmatpush.msra.mxu2 %v329_v30  ;;  %376 = vmatpush.msra.mxu0 %v329_v30 }
  0x30   : > { %600 = vmatpush.msra.mxu3 %v345_v31  ;;  %380 = vmatmul.f32.vlgmr.msra.gmra.mxu2 %v327_v32 }
  0x31   : > { %403 = vmatmul.f32.vlgmr.msra.gmra.mxu3 %v328_v33  ;;  %399 = vmatpush.msra.mxu1 %v345_v31 }
  0x32   : > { %377 = vmatmul.f32.vlgmr.msra.gmra.mxu0 %v325_v34  ;;  %400 = vmatmul.f32.vlgmr.msra.gmra.mxu1 %v326_v35 }
  0xaf   : > { %v378_v37 = vpop.f32.mrf.mxu0  ;;  %v401_v38 = vpop.f32.mrf.mxu1 }
  0xb0   : > { %v402_v40 = vadd.f32 %v401_v38, %v378_v37 }
  0xb2   : > { %v420_v43 = vadd.f32 %v636_v36, %v402_v40 }
  0xb3   : > { %v381_v45 = vpop.f32.mrf.mxu2 }
  0xb4   : > { %v404_v46 = vpop.f32.mrf.mxu3  ;;  %vm423_vm0 = vcmp.ge.f32.partialorder %v420_v43, 0.0  ;;  %v426_v48 = vmul.f32 %v425_v42, %v420_v43 }
  0xb5   : > { %v405_v49 = vadd.f32 %v404_v46, %v381_v45 }
  0xb6   : > { %v428_v50 = vsel %vm423_vm0, %v420_v43, %v426_v48 }
  0xb7   : > { %v421_v51 = vadd.f32 %v636_v36, %v405_v49  ;;  %v436_v52 = vadd.f32 %v434_v44, %v428_v50 }
  0xb9   : > { %vm424_vm1 = vcmp.ge.f32.partialorder %v421_v51, 0.0  ;;  %v427_v54 = vmul.f32 %v425_v42, %v421_v51  ;;  %438 = vst [vmem:[%s315_s17] sm:$0xff] %v436_v52 }
  0xbb   : > { %v429_v55 = vsel %vm424_vm1, %v421_v51, %v427_v54 }
  0xbc   : > { %v437_v56 = vadd.f32 %v435_v53, %v429_v55 }
  0xbe   : > { %439 = vst [vmem:[%s315_s17 + $0x8] sm:$0xff] %v437_v56 }
  0xbf PF: > { %s16_s20 = sadd.s32 1, %s678_s20   ;;  %s863_s18 = smov %s674_s19 }
  0xc0   : > { %p13_p8 = scmp.ge.s32.totalorder %s16_s20, 4   ;;  %s864_s19 = smov %s866_s22 }
  0xc2   :  { %15 = sbr.rel (!%p13_p8) target bundleno = 2 (0x2), region = 89 }
  0xc7   :  { %462 = vsyncpa [#allocation4], 1 }
  0xc8   :  { %464 = vsyncpa [#allocation4 + $0x1], 1 }

</bundles_post_ra>
